<compile_context>
chip_gen: v5e
topology: v5e:2x2
jax: 0.10.0
libtpu: 0.0.40
codegen_flags: <defaults>
</compile_context>

<pallas_src>
import math

import jax
import jax.numpy as jnp
from jax.experimental import pallas as pl
from jax.experimental.pallas import tpu as pltpu

# ---- synthetic encoder config (small, consistent with a T5-like encoder) ----
BATCH = 2
SEQ = 8
HIDDEN = 32
NUM_HEADS = 2
HEAD_DIM = HIDDEN // NUM_HEADS
FFN = 64
VOCAB = 128
EPS = 1e-6
NEG_INF = -1e9
PARAM_DTYPE = jnp.bfloat16  # mirrors dtype=torch.bfloat16 in the wrapper


def _rmsnorm_nogain(x):
    """RMS-normalize over the last axis (gain is folded into the next weight)."""
    var = jnp.mean(x * x, axis=-1, keepdims=True)
    return x * jax.lax.rsqrt(var + EPS)


def encoder_kernel(emb_ref, bias_ref, wqkv_ref, wo_ref, w1_ref, w2_ref,
                   gf_ref, o_ref):
    # emb_ref:  (N=B*S, D)        bf16   token embeddings (gather done outside)
    # bias_ref: (B, S)            f32    additive key-padding bias (0 / -1e9)
    # wqkv_ref: (D, 3*H*Dh)       bf16   [Q*scale | K | V], g1 folded in
    # wo_ref:   (H*Dh, D)         bf16
    # w1_ref:   (D, FFN)          bf16   g2 folded in
    # w2_ref:   (FFN, D)          bf16
    # gf_ref:   (1, D)            f32    final RMSNorm gain
    N, D = emb_ref.shape
    S = SEQ
    B = N // S
    H, Dh = NUM_HEADS, HEAD_DIM
    HD = H * Dh

    # Elementwise math in f32 (v5e has no bf16 VALU); matmul operands bf16.
    x = emb_ref[...].astype(jnp.float32)                        # (N, D)

    # ---------------- self-attention --------------------------------------
    # g1 and 1/sqrt(Dh) are pre-folded into wqkv -> single lane-dense matmul.
    h = _rmsnorm_nogain(x).astype(jnp.bfloat16)                 # (N, D)
    qkv = jnp.dot(h, wqkv_ref[...],
                  preferred_element_type=jnp.float32)           # (N, 3*HD)
    # One f32 reshape (clean 8-sublane split), then ONE cast to bf16.
    qkv = qkv.reshape(B, S, 3 * HD).astype(jnp.bfloat16)        # (B, S, 3*HD)
    q = qkv[..., 0:HD]                                          # (B, S, HD)
    k = qkv[..., HD:2 * HD]
    v = qkv[..., 2 * HD:3 * HD]

    bias_b = bias_ref[...][:, None, :]                          # (B, 1, S) f32

    # Score/context matmuls are intrinsically batched over (B, H); H is tiny
    # and static, so a 2-iteration Python loop of B-batched einsums is used.
    ctx_heads = []
    for hh in range(H):
        sl = slice(hh * Dh, (hh + 1) * Dh)
        s = jnp.einsum('bqd,bkd->bqk', q[..., sl], k[..., sl],
                       preferred_element_type=jnp.float32)      # (B, S, S)
        s = s + bias_b                                          # key-padding bias
        s = s - jnp.max(s, axis=-1, keepdims=True)
        p = jnp.exp(s)
        p = p * pl.reciprocal(jnp.sum(p, axis=-1, keepdims=True), approx=True)
        ctx_heads.append(
            jnp.einsum('bqk,bkd->bqd', p.astype(jnp.bfloat16), v[..., sl],
                       preferred_element_type=jnp.float32))     # (B, S, Dh) f32

    # concat heads on the lane axis -> ONE (N, HD) @ (HD, D) output projection.
    ctx = jnp.concatenate(ctx_heads, axis=-1)                   # (B, S, HD) f32
    ctx = ctx.reshape(N, HD).astype(jnp.bfloat16)               # (N, HD) bf16
    x = x + jnp.dot(ctx, wo_ref[...],
                    preferred_element_type=jnp.float32)         # (N, D)

    # ---------------- feed-forward (g2 folded into w1) ---------------------
    h2 = _rmsnorm_nogain(x).astype(jnp.bfloat16)                # (N, D)
    f = jnp.dot(h2, w1_ref[...],
                preferred_element_type=jnp.float32)             # (N, FFN)
    f = jnp.maximum(f, 0.0).astype(jnp.bfloat16)
    x = x + jnp.dot(f, w2_ref[...],
                    preferred_element_type=jnp.float32)         # (N, D)

    # ---------------- final norm -> last_hidden_state ----------------------
    x = _rmsnorm_nogain(x) * gf_ref[...]
    # TODO(synk): at real T5 scale (D >= 1024) the output is automatically
    # lane-dense; at this toy size a (N, 32)-lane masked store is cheaper than
    # an in-kernel (N, D) -> (B, S*D) cross-tile relayout.
    o_ref[...] = x.astype(o_ref.dtype)


def pack_params(params):
    """One-time weight repacking (load time, NOT in the per-call path).

    Folds the softmax scale into Wq, the RMSNorm gains g1/g2 into the
    following weight matrices (diag(g) @ W, exact), and fuses [Q|K|V].
    """
    D, Dh = HIDDEN, HEAD_DIM
    scale = 1.0 / math.sqrt(Dh)

    g1 = params["ln1"].astype(jnp.float32)
    g2 = params["ln2"].astype(jnp.float32)

    wq = params["wq"].astype(jnp.float32) * scale               # (D, H*Dh)
    wk = params["wk"].astype(jnp.float32)
    wv = params["wv"].astype(jnp.float32)
    wqkv = jnp.concatenate([wq, wk, wv], axis=-1)               # (D, 3*H*Dh)
    wqkv = (g1[:, None] * wqkv).astype(PARAM_DTYPE)             # fold g1 (f32 then cast)

    w1 = (g2[:, None] * params["wff1"].astype(jnp.float32)).astype(PARAM_DTYPE)
    return {
        "embed": params["embed"],                               # (VOCAB, D) bf16
        "wqkv": wqkv,                                           # (D, 3*H*Dh) bf16
        "wo": params["wo"].astype(PARAM_DTYPE),                 # (H*Dh, D)   bf16
        "w1": w1,                                               # (D, FFN)    bf16
        "w2": params["wff2"].astype(PARAM_DTYPE),               # (FFN, D)    bf16
        "gf": params["lnf"].astype(jnp.float32).reshape(1, D),  # (1, D)      f32
    }


def _forward_impl(input_ids, packed):
    """Mirrors TextEncoder2Wrapper.forward: returns (last_hidden_state,)."""
    B, S = input_ids.shape
    D = HIDDEN

    # TODO(synk): embedding gather (jnp.take) kept outside the kernel — gather
    # has no clean small-shape Pallas equivalent here.
    emb = jnp.take(packed["embed"], input_ids, axis=0).reshape(B * S, D)  # bf16

    # attention_mask = (input_ids != 0) -> additive key-padding bias (B, S).
    bias = jnp.where(input_ids != 0, 0.0, NEG_INF).astype(jnp.float32)

    vmem = pl.BlockSpec(memory_space=pltpu.MemorySpace.VMEM)
    # Single gridless invocation: whole batch + all weights resident in VMEM
    # (working set « 1 MiB on v5e/v6e/v7x), no per-grid-step overhead.
    # TODO(synk): at real T5 scale keep weights un-replicated in HBM and use a
    # K-tiled accumulating grid (f32 VMEM acc, pl.when init/finalize) with a
    # "parallel" batch/query axis for v7x's 2 TensorCores and 64 MiB VMEM.
    out2d = pl.pallas_call(
        encoder_kernel,
        out_shape=jax.ShapeDtypeStruct((B * S, D), PARAM_DTYPE),
        in_specs=[vmem] * 7,
        out_specs=vmem,
    )(emb, bias, packed["wqkv"], packed["wo"], packed["w1"], packed["w2"],
      packed["gf"])

    return (out2d.reshape(B, S, D),)


text_encoder2_forward = jax.jit(_forward_impl)


def init_params(key):
    ks = jax.random.split(key, 8)
    init = lambda k, shape, s=0.02: (jax.random.normal(k, shape, jnp.float32) * s
                                     ).astype(PARAM_DTYPE)
    return {
        "embed": init(ks[0], (VOCAB, HIDDEN)),
        "wq": init(ks[1], (HIDDEN, HIDDEN)),
        "wk": init(ks[2], (HIDDEN, HIDDEN)),
        "wv": init(ks[3], (HIDDEN, HIDDEN)),
        "wo": init(ks[4], (HIDDEN, HIDDEN)),
        "wff1": init(ks[5], (HIDDEN, FFN)),
        "wff2": init(ks[6], (FFN, HIDDEN)),
        "ln1": jnp.ones((HIDDEN,), PARAM_DTYPE),
        "ln2": jnp.ones((HIDDEN,), PARAM_DTYPE),
        "lnf": jnp.ones((HIDDEN,), PARAM_DTYPE),
    }


if __name__ == "__main__":
    key = jax.random.PRNGKey(0)
    pkey, ikey = jax.random.split(key)
    params = init_params(pkey)

    # One-time weight packing at load time (hoisted out of the forward path).
    packed = jax.tree_util.tree_map(jax.block_until_ready, pack_params(params))

    # Deterministic input_ids with some padding zeros (exercises the mask).
    input_ids = jax.random.randint(ikey, (BATCH, SEQ), 1, VOCAB, dtype=jnp.int32)
    input_ids = input_ids.at[:, -2:].set(0)   # padded tail -> attention_mask 0

    (last_hidden_state,) = text_encoder2_forward(input_ids, packed)
    jax.block_until_ready(last_hidden_state)

    assert last_hidden_state.shape == (BATCH, SEQ, HIDDEN)
    assert last_hidden_state.dtype == PARAM_DTYPE
    print("KERNEL_OK")
</pallas_src>

<mosaic_0001>
module attributes {stable_mosaic.version = 11 : i64} {
  func.func @encoder_kernel(%arg0: memref<16x32xbf16, #tpu.memory_space<vmem>>, %arg1: memref<2x8xf32, #tpu.memory_space<vmem>>, %arg2: memref<32x96xbf16, #tpu.memory_space<vmem>>, %arg3: memref<32x32xbf16, #tpu.memory_space<vmem>>, %arg4: memref<32x64xbf16, #tpu.memory_space<vmem>>, %arg5: memref<64x32xbf16, #tpu.memory_space<vmem>>, %arg6: memref<1x32xf32, #tpu.memory_space<vmem>>, %arg7: memref<16x32xbf16, #tpu.memory_space<vmem>>) attributes {dimension_semantics = [], scalar_prefetch = 0 : i64, scratch_operands = 0 : i64, tpu.core_type = #tpu.core_type<tc>} {
    %c0 = arith.constant 0 : index
    %c0_0 = arith.constant 0 : index
    %0 = vector.load %arg0[%c0, %c0_0] : memref<16x32xbf16, #tpu.memory_space<vmem>>, vector<16x32xbf16>
    %1 = arith.extf %0 : vector<16x32xbf16> to vector<16x32xf32>
    %2 = arith.mulf %1, %1 : vector<16x32xf32>
    %cst = arith.constant dense<0.000000e+00> : vector<16xf32>
    %3 = vector.multi_reduction <add>, %2, %cst [1] : vector<16x32xf32> to vector<16xf32>
    %4 = vector.shape_cast %3 : vector<16xf32> to vector<16x1xf32>
    %cst_1 = arith.constant 3.200000e+01 : f32
    %5 = vector.broadcast %cst_1 : f32 to vector<16x1xf32>
    %6 = arith.divf %4, %5 : vector<16x1xf32>
    %cst_2 = arith.constant 9.99999997E-7 : f32
    %7 = vector.broadcast %cst_2 : f32 to vector<16x1xf32>
    %8 = arith.addf %6, %7 : vector<16x1xf32>
    %9 = math.rsqrt %8 : vector<16x1xf32>
    %10 = vector.broadcast %9 : vector<16x1xf32> to vector<16x32xf32>
    %11 = arith.mulf %1, %10 : vector<16x32xf32>
    %12 = arith.truncf %11 : vector<16x32xf32> to vector<16x32xbf16>
    %c0_3 = arith.constant 0 : index
    %c0_4 = arith.constant 0 : index
    %13 = vector.load %arg2[%c0_3, %c0_4] : memref<32x96xbf16, #tpu.memory_space<vmem>>, vector<32x96xbf16>
    %cst_5 = arith.constant dense<0.000000e+00> : vector<16x96xf32>
    %14 = tpu.matmul %12, %13, %cst_5 {dimension_numbers = #tpu.dot_dimension_numbers<[1], [0], [0], [1], [0, 0, 1, 1], [], []>} : vector<16x32xbf16>, vector<32x96xbf16>, vector<16x96xf32> -> vector<16x96xf32>
    %15 = vector.shape_cast %14 : vector<16x96xf32> to vector<2x8x96xf32>
    %16 = arith.truncf %15 : vector<2x8x96xf32> to vector<2x8x96xbf16>
    %17 = vector.extract_strided_slice %16 {offsets = [0, 0, 0], sizes = [2, 8, 32], strides = [1, 1, 1]} : vector<2x8x96xbf16> to vector<2x8x32xbf16>
    %18 = vector.extract_strided_slice %16 {offsets = [0, 0, 32], sizes = [2, 8, 32], strides = [1, 1, 1]} : vector<2x8x96xbf16> to vector<2x8x32xbf16>
    %19 = vector.extract_strided_slice %16 {offsets = [0, 0, 64], sizes = [2, 8, 32], strides = [1, 1, 1]} : vector<2x8x96xbf16> to vector<2x8x32xbf16>
    %c0_6 = arith.constant 0 : index
    %c0_7 = arith.constant 0 : index
    %20 = vector.load %arg1[%c0_6, %c0_7] : memref<2x8xf32, #tpu.memory_space<vmem>>, vector<2x8xf32>
    %21 = vector.shape_cast %20 : vector<2x8xf32> to vector<2x1x8xf32>
    %22 = vector.extract_strided_slice %17 {offsets = [0, 0, 0], sizes = [2, 8, 16], strides = [1, 1, 1]} : vector<2x8x32xbf16> to vector<2x8x16xbf16>
    %23 = vector.extract_strided_slice %18 {offsets = [0, 0, 0], sizes = [2, 8, 16], strides = [1, 1, 1]} : vector<2x8x32xbf16> to vector<2x8x16xbf16>
    "tpu.trace_start"() <{level = 10 : i32, message = "bqd,bkd->bqk"}> : () -> ()
    %cst_8 = arith.constant dense<0.000000e+00> : vector<2x8x8xf32>
    %24 = tpu.matmul %22, %23, %cst_8 {dimension_numbers = #tpu.dot_dimension_numbers<[2], [2], [1], [1], [0, 0, 0, 1, 1, 1], [0], [0]>} : vector<2x8x16xbf16>, vector<2x8x16xbf16>, vector<2x8x8xf32> -> vector<2x8x8xf32>
    "tpu.trace_stop"() : () -> ()
    %25 = vector.broadcast %21 : vector<2x1x8xf32> to vector<2x8x8xf32>
    %26 = arith.addf %24, %25 : vector<2x8x8xf32>
    %cst_9 = arith.constant dense<0xFF800000> : vector<2x8xf32>
    %27 = vector.multi_reduction <maximumf>, %26, %cst_9 [2] : vector<2x8x8xf32> to vector<2x8xf32>
    %28 = vector.shape_cast %27 : vector<2x8xf32> to vector<2x8x1xf32>
    %29 = vector.broadcast %28 : vector<2x8x1xf32> to vector<2x8x8xf32>
    %30 = arith.subf %26, %29 : vector<2x8x8xf32>
    %31 = math.exp %30 : vector<2x8x8xf32>
    %cst_10 = arith.constant dense<0.000000e+00> : vector<2x8xf32>
    %32 = vector.multi_reduction <add>, %31, %cst_10 [2] : vector<2x8x8xf32> to vector<2x8xf32>
    %33 = vector.shape_cast %32 : vector<2x8xf32> to vector<2x8x1xf32>
    %34 = tpu.reciprocal %33 {approx = true} : vector<2x8x1xf32> -> vector<2x8x1xf32>
    %35 = vector.broadcast %34 : vector<2x8x1xf32> to vector<2x8x8xf32>
    %36 = arith.mulf %31, %35 : vector<2x8x8xf32>
    %37 = arith.truncf %36 : vector<2x8x8xf32> to vector<2x8x8xbf16>
    %38 = vector.extract_strided_slice %19 {offsets = [0, 0, 0], sizes = [2, 8, 16], strides = [1, 1, 1]} : vector<2x8x32xbf16> to vector<2x8x16xbf16>
    "tpu.trace_start"() <{level = 10 : i32, message = "bqk,bkd->bqd"}> : () -> ()
    %cst_11 = arith.constant dense<0.000000e+00> : vector<2x8x16xf32>
    %39 = tpu.matmul %37, %38, %cst_11 {dimension_numbers = #tpu.dot_dimension_numbers<[2], [1], [1], [2], [0, 0, 0, 1, 1, 2], [0], [0]>} : vector<2x8x8xbf16>, vector<2x8x16xbf16>, vector<2x8x16xf32> -> vector<2x8x16xf32>
    "tpu.trace_stop"() : () -> ()
    %40 = vector.extract_strided_slice %17 {offsets = [0, 0, 16], sizes = [2, 8, 16], strides = [1, 1, 1]} : vector<2x8x32xbf16> to vector<2x8x16xbf16>
    %41 = vector.extract_strided_slice %18 {offsets = [0, 0, 16], sizes = [2, 8, 16], strides = [1, 1, 1]} : vector<2x8x32xbf16> to vector<2x8x16xbf16>
    "tpu.trace_start"() <{level = 10 : i32, message = "bqd,bkd->bqk"}> : () -> ()
    %cst_12 = arith.constant dense<0.000000e+00> : vector<2x8x8xf32>
    %42 = tpu.matmul %40, %41, %cst_12 {dimension_numbers = #tpu.dot_dimension_numbers<[2], [2], [1], [1], [0, 0, 0, 1, 1, 1], [0], [0]>} : vector<2x8x16xbf16>, vector<2x8x16xbf16>, vector<2x8x8xf32> -> vector<2x8x8xf32>
    "tpu.trace_stop"() : () -> ()
    %43 = vector.broadcast %21 : vector<2x1x8xf32> to vector<2x8x8xf32>
    %44 = arith.addf %42, %43 : vector<2x8x8xf32>
    %cst_13 = arith.constant dense<0xFF800000> : vector<2x8xf32>
    %45 = vector.multi_reduction <maximumf>, %44, %cst_13 [2] : vector<2x8x8xf32> to vector<2x8xf32>
    %46 = vector.shape_cast %45 : vector<2x8xf32> to vector<2x8x1xf32>
    %47 = vector.broadcast %46 : vector<2x8x1xf32> to vector<2x8x8xf32>
    %48 = arith.subf %44, %47 : vector<2x8x8xf32>
    %49 = math.exp %48 : vector<2x8x8xf32>
    %cst_14 = arith.constant dense<0.000000e+00> : vector<2x8xf32>
    %50 = vector.multi_reduction <add>, %49, %cst_14 [2] : vector<2x8x8xf32> to vector<2x8xf32>
    %51 = vector.shape_cast %50 : vector<2x8xf32> to vector<2x8x1xf32>
    %52 = tpu.reciprocal %51 {approx = true} : vector<2x8x1xf32> -> vector<2x8x1xf32>
    %53 = vector.broadcast %52 : vector<2x8x1xf32> to vector<2x8x8xf32>
    %54 = arith.mulf %49, %53 : vector<2x8x8xf32>
    %55 = arith.truncf %54 : vector<2x8x8xf32> to vector<2x8x8xbf16>
    %56 = vector.extract_strided_slice %19 {offsets = [0, 0, 16], sizes = [2, 8, 16], strides = [1, 1, 1]} : vector<2x8x32xbf16> to vector<2x8x16xbf16>
    "tpu.trace_start"() <{level = 10 : i32, message = "bqk,bkd->bqd"}> : () -> ()
    %cst_15 = arith.constant dense<0.000000e+00> : vector<2x8x16xf32>
    %57 = tpu.matmul %55, %56, %cst_15 {dimension_numbers = #tpu.dot_dimension_numbers<[2], [1], [1], [2], [0, 0, 0, 1, 1, 2], [0], [0]>} : vector<2x8x8xbf16>, vector<2x8x16xbf16>, vector<2x8x16xf32> -> vector<2x8x16xf32>
    "tpu.trace_stop"() : () -> ()
    %58 = tpu.concatenate %39, %57 in 2 : vector<2x8x16xf32>, vector<2x8x16xf32> -> vector<2x8x32xf32>
    %59 = vector.shape_cast %58 : vector<2x8x32xf32> to vector<16x32xf32>
    %60 = arith.truncf %59 : vector<16x32xf32> to vector<16x32xbf16>
    %c0_16 = arith.constant 0 : index
    %c0_17 = arith.constant 0 : index
    %61 = vector.load %arg3[%c0_16, %c0_17] : memref<32x32xbf16, #tpu.memory_space<vmem>>, vector<32x32xbf16>
    %cst_18 = arith.constant dense<0.000000e+00> : vector<16x32xf32>
    %62 = tpu.matmul %60, %61, %cst_18 {dimension_numbers = #tpu.dot_dimension_numbers<[1], [0], [0], [1], [0, 0, 1, 1], [], []>} : vector<16x32xbf16>, vector<32x32xbf16>, vector<16x32xf32> -> vector<16x32xf32>
    %63 = arith.addf %1, %62 : vector<16x32xf32>
    %64 = arith.mulf %63, %63 : vector<16x32xf32>
    %cst_19 = arith.constant dense<0.000000e+00> : vector<16xf32>
    %65 = vector.multi_reduction <add>, %64, %cst_19 [1] : vector<16x32xf32> to vector<16xf32>
    %66 = vector.shape_cast %65 : vector<16xf32> to vector<16x1xf32>
    %cst_20 = arith.constant 3.200000e+01 : f32
    %67 = vector.broadcast %cst_20 : f32 to vector<16x1xf32>
    %68 = arith.divf %66, %67 : vector<16x1xf32>
    %cst_21 = arith.constant 9.99999997E-7 : f32
    %69 = vector.broadcast %cst_21 : f32 to vector<16x1xf32>
    %70 = arith.addf %68, %69 : vector<16x1xf32>
    %71 = math.rsqrt %70 : vector<16x1xf32>
    %72 = vector.broadcast %71 : vector<16x1xf32> to vector<16x32xf32>
    %73 = arith.mulf %63, %72 : vector<16x32xf32>
    %74 = arith.truncf %73 : vector<16x32xf32> to vector<16x32xbf16>
    %c0_22 = arith.constant 0 : index
    %c0_23 = arith.constant 0 : index
    %75 = vector.load %arg4[%c0_22, %c0_23] : memref<32x64xbf16, #tpu.memory_space<vmem>>, vector<32x64xbf16>
    %cst_24 = arith.constant dense<0.000000e+00> : vector<16x64xf32>
    %76 = tpu.matmul %74, %75, %cst_24 {dimension_numbers = #tpu.dot_dimension_numbers<[1], [0], [0], [1], [0, 0, 1, 1], [], []>} : vector<16x32xbf16>, vector<32x64xbf16>, vector<16x64xf32> -> vector<16x64xf32>
    %cst_25 = arith.constant 0.000000e+00 : f32
    %77 = vector.broadcast %cst_25 : f32 to vector<16x64xf32>
    %78 = arith.maximumf %76, %77 : vector<16x64xf32>
    %79 = arith.truncf %78 : vector<16x64xf32> to vector<16x64xbf16>
    %c0_26 = arith.constant 0 : index
    %c0_27 = arith.constant 0 : index
    %80 = vector.load %arg5[%c0_26, %c0_27] : memref<64x32xbf16, #tpu.memory_space<vmem>>, vector<64x32xbf16>
    %cst_28 = arith.constant dense<0.000000e+00> : vector<16x32xf32>
    %81 = tpu.matmul %79, %80, %cst_28 {dimension_numbers = #tpu.dot_dimension_numbers<[1], [0], [0], [1], [0, 0, 1, 1], [], []>} : vector<16x64xbf16>, vector<64x32xbf16>, vector<16x32xf32> -> vector<16x32xf32>
    %82 = arith.addf %63, %81 : vector<16x32xf32>
    %83 = arith.mulf %82, %82 : vector<16x32xf32>
    %cst_29 = arith.constant dense<0.000000e+00> : vector<16xf32>
    %84 = vector.multi_reduction <add>, %83, %cst_29 [1] : vector<16x32xf32> to vector<16xf32>
    %85 = vector.shape_cast %84 : vector<16xf32> to vector<16x1xf32>
    %cst_30 = arith.constant 3.200000e+01 : f32
    %86 = vector.broadcast %cst_30 : f32 to vector<16x1xf32>
    %87 = arith.divf %85, %86 : vector<16x1xf32>
    %cst_31 = arith.constant 9.99999997E-7 : f32
    %88 = vector.broadcast %cst_31 : f32 to vector<16x1xf32>
    %89 = arith.addf %87, %88 : vector<16x1xf32>
    %90 = math.rsqrt %89 : vector<16x1xf32>
    %91 = vector.broadcast %90 : vector<16x1xf32> to vector<16x32xf32>
    %92 = arith.mulf %82, %91 : vector<16x32xf32>
    %c0_32 = arith.constant 0 : index
    %c0_33 = arith.constant 0 : index
    %93 = vector.load %arg6[%c0_32, %c0_33] : memref<1x32xf32, #tpu.memory_space<vmem>>, vector<1x32xf32>
    %94 = vector.broadcast %93 : vector<1x32xf32> to vector<16x32xf32>
    %95 = arith.mulf %92, %94 : vector<16x32xf32>
    %96 = arith.truncf %95 : vector<16x32xf32> to vector<16x32xbf16>
    %c0_34 = arith.constant 0 : index
    %c0_35 = arith.constant 0 : index
    %97 = vector.load %arg7[%c0_34, %c0_35] : memref<16x32xbf16, #tpu.memory_space<vmem>>, vector<16x32xbf16>
    tpu.vector_store %arg7[%c0_34, %c0_35], %96 {strides = array<i32>} : memref<16x32xbf16, #tpu.memory_space<vmem>>, vector<16x32xbf16>,
    return
  }
}

</mosaic_0001>

<bundles_post_ra>
// kernel: _forward_impl.1
= control target key start
LH: loop header
LB: loop body
LE: loop exit
PB: predicated region body
PF: predicated region fallthrough
CT: control target
= control target key end

     0   :  { %s874_s0 = inlined_call_operand.vmem [shape: bf16[16,32], index: 0, kind: input, shape index: {}]   ;;  %s875_s1 = inlined_call_operand.vmem [shape: f32[2,8], index: 1, kind: input, shape index: {}]   ;;  %s876_s2 = inlined_call_operand.vmem [shape: bf16[32,96], index: 2, kind: input, shape index: {}]   ;;  %s877_s3 = inlined_call_operand.vmem [shape: bf16[32,32], index: 3, kind: input, shape index: {}]   ;;  %s878_s4 = inlined_call_operand.vmem [shape: bf16[32,64], index: 4, kind: input, shape index: {}]   ;;  %s879_s5 = inlined_call_operand.vmem [shape: bf16[64,32], index: 5, kind: input, shape index: {}]   ;;  %s880_s6 = inlined_call_operand.vmem [shape: f32[1,32], index: 6, kind: input, shape index: {}]   ;;  %s881_s7 = inlined_call_operand.hbm [shape: bf16[16,32], index: 7, kind: output, shape index: {}]  }
   0x1   :  { %v641_v0 = vld [vmem:[%s874_s0] sm:$0xff]  }
   0x2   :  { %v767_v1 = vunpack.c.l.bf16 %v641_v0 }
   0x3   :  { %12 = vsyncpa [#allocation3], 0  ;;  %vm34_vm0 = vcmask 261120   ;;  %v771_v3 = vunpack.c.h.bf16 %v641_v0  ;;  %v715_v7 = vmov 32.0   ;;  %v631_v13 = vld [vmem:[%s876_s2 + $0x8] sm:$0xff]  ;;  %v630_v14 = vld [vmem:[%s876_s2] sm:$0xff] }
   0x4   :  { %v32_v2 = vmul.f32 %v767_v1, %v767_v1  ;;  %659 = vrcp.f32 %v715_v7  ;;  %100 = vmatpush.bf16.msra.mxu0 %v631_v13  ;;  %s716_s2 = smov 112   ;;  %s717_s29 = smov 80   ;;  %vm122_vm8 = vcmask 130048   ;;  %v110_v57 = vld [vmem:[%s875_s1] sm:$0x3]  ;;  %vm166_vm9 = vcmask 64512  }
   0x5   :  { %v33_v5 = vmul.f32 %v771_v3, %v771_v3  ;;  %s718_s30 = smov 96   ;;  %v113_v58 = vperm.slane %v110_v57, 0  ;;  %s719_s10 = smov 64   ;;  %vm196_vm10 = vcmask 1043456  }
   0x6   :  { %v35_v4 = vsel %vm34_vm0, %v32_v2, 0.0  ;;  %s720_s1 = smov 48   ;;  %s721_s13 = smov 16  }
   0x7   :  { %36 = vadd.xlane.f32.xlu0 %v35_v4  ;;  %v38_v6 = vsel %vm34_vm0, %v33_v5, 0.0  ;;  %v112_v4 = vrot.slane %v110_v57, 1  ;;  %s722_s26 = smov [#allocation2]  }
   0x8   :  { %101 = vmatpush.bf16.msra.mxu0 %v630_v14  ;;  %s564_s27 = sshll.u32 %s722_s26, 4  ;;  %s565_s27 = int_to_ptr.vmem [resolvable:$true] %s564_s27 }
   0xa   :  { %v660_v8 = vpop.eup %659 }
   0xb   :  { %v42_v9 = vmul.f32 32.0, %v660_v8  ;;  %vm46_vm1 = vweird.f32 %v660_v8 }
   0xd   :  { %v43_v10 = vsub.f32 1.0, %v42_v9 }
   0xf   :  { %39 = vadd.xlane.f32.xlu0 %v38_v6  ;;  %v44_v11 = vmul.f32 %v660_v8, %v43_v10  ;;  %v114_v6 = vperm.slane %v112_v4, 0 }
  0x11   :  { %v45_v12 = vadd.f32 %v660_v8, %v44_v11 }
  0x13   :  { %v783_v15 = vsel %vm46_vm1, %v660_v8, %v45_v12 }
  0x7a   :  { %v37_v16 = vpop.xlane.xlu0 %36 }
  0x7b   :  { %v48_v17 = vmul.f32 %v783_v15, %v37_v16 }
  0x7d   :  { %v50_v18 = vadd.f32 1e-06, %v48_v17 }
  0x7f   :  { %661 = vrsqrt.f32 %v50_v18  ;;  %vm58_vm3 = vweird.f32 %v50_v18 }
  0x82   :  { %v40_v19 = vpop.xlane.xlu0 %39 }
  0x83   :  { %v49_v20 = vmul.f32 %v783_v15, %v40_v19 }
  0x85   :  { %v662_v21 = vpop.eup %661  ;;  %v51_v22 = vadd.f32 1e-06, %v49_v20 }
  0x86   :  { %v53_v23 = vmul.f32 %v662_v21, %v50_v18  ;;  %vm59_vm2 = vweird.f32 %v662_v21 }
  0x87   :  { %663 = vrsqrt.f32 %v51_v22  ;;  %vm60_vm5 = vmor %vm58_vm3, %vm59_vm2  ;;  %vm68_vm6 = vweird.f32 %v51_v22  ;;  %vm495_vm2 = vcmask 523264  }
  0x88   :  { %v54_v24 = vmul.f32 %v662_v21, %v53_v23 }
  0x8a   :  { %v55_v25 = vmul.f32 0.5, %v54_v24 }
  0x8c   :  { %v56_v27 = vsub.f32 1.5, %v55_v25 }
  0x8d   :  { %v664_v26 = vpop.eup %663 }
  0x8e   :  { %v63_v28 = vmul.f32 %v664_v26, %v51_v22  ;;  %v57_v30 = vmul.f32 %v662_v21, %v56_v27  ;;  %vm69_vm4 = vweird.f32 %v664_v26 }
  0x8f   :  { %vm70_vm7 = vmor %vm68_vm6, %vm69_vm4  ;;  %vm557_vm6 = vcmask 257024  }
  0x90   :  { %v64_v29 = vmul.f32 %v664_v26, %v63_v28  ;;  %v61_v34 = vsel %vm60_vm5, %v662_v21, %v57_v30 }
  0x91   :  { %v72_v36 = vmul.f32 %v767_v1, %v61_v34 }
  0x92   :  { %v65_v31 = vmul.f32 0.5, %v64_v29 }
  0x94   :  { %v66_v32 = vsub.f32 1.5, %v65_v31 }
  0x96   :  { %v67_v33 = vmul.f32 %v664_v26, %v66_v32 }
  0x98   :  { %v71_v35 = vsel %vm70_vm7, %v664_v26, %v67_v33 }
  0x99   :  { %v73_v37 = vmul.f32 %v771_v3, %v71_v35 }
  0x9b   :  { %v74_v38 = vpack.c.bf16 %v73_v37, %v72_v36 }
  0x9d   :  { %586 = vmatmul.msk.bf16.vlgmr.msra.gmra.mxu0 %vm34_vm0, %v74_v38 }
 0x11a   :  { %v103_v39 = vpop.f32.mrf.mxu0 }
 0x11b   :  { %v108_v40 = vpack.c.bf16 %v103_v39, %v103_v39 }
 0x11d   :  { %v118_v41 = vunpack.c.l.b16 %v108_v40 }
 0x11f   :  { %v119_v42 = vpack.c.b16 %v118_v41, %v118_v41 }
 0x121   :  { %234 = vrot.lane.b32.xlu0 %v119_v42, %s716_s2  ;;  %236 = vrot.lane.b32.xlu2 %v119_v42, %s717_s29 }
 0x122   :  { %120 = vrot.lane.b32.xlu1 %v119_v42, %s718_s30  ;;  %v105_v43 = vpop.f32.mrf.mxu0 }
 0x123   :  { %v109_v44 = vpack.c.bf16 %v105_v43, %v105_v43 }
 0x125   :  { %v143_v45 = vunpack.c.l.b16 %v109_v44 }
 0x127   :  { %v790_v46 = vpack.c.b16 %v143_v45, %v143_v45 }
 0x129   :  { %259 = vrot.lane.b32.xlu2 %v790_v46, %s717_s29  ;;  %s723_s29 = smov 4  }
 0x12a   :  { %145 = vrot.lane.b32.xlu1 %v790_v46, %s718_s30 }
 0x132   :  { %257 = vrot.lane.b32.xlu1 %v790_v46, %s716_s2  ;;  %s566_s2 = sshll.u32 %s881_s7, 4  ;;  %s567_s2 = int_to_ptr.hbm [resolvable:$true] %s566_s2 }
 0x17b   :  { %v237_v47 = vpop.permute.xlu2 %236 }
 0x17c   :  { %v242_v48 = vsel %vm122_vm8, %v237_v47, 0 }
 0x17d   :  { %251 = vmatpush.bf16.xpose.msrb.mxu0 %v242_v48 }
 0x183   :  { %v260_v49 = vpop.permute.xlu2 %259 }
 0x184   :  { %v265_v53 = vsel %vm122_vm8, %v260_v49, 0 }
 0x193   :  { %v235_v50 = vpop.permute.xlu0 %234 }
 0x194   :  { %v121_v51 = vpop.permute.xlu1 %120  ;;  %591 = vmatmul.msk.bf16.vlgmr.msrb.gmra.mxu0 %vm122_vm8, %v235_v50 }
 0x195   :  { %v127_v52 = vsel %vm122_vm8, %v121_v51, 0 }
 0x196   :  { %136 = vmatpush.bf16.xpose.msra.mxu1 %v127_v52 }
 0x19c   :  { %v146_v54 = vpop.permute.xlu1 %145 }
 0x19d   :  { %587 = vmatmul.msk.bf16.vlgmr.msra.gmra.mxu1 %vm122_vm8, %v108_v40  ;;  %v151_v55 = vsel %vm122_vm8, %v146_v54, 0 }
 0x19e   :  { %274 = vmatpush.bf16.xpose.msrb.mxu1 %v265_v53  ;;  %160 = vmatpush.bf16.xpose.msra.mxu2 %v151_v55 }
 0x1a4   :  { %v258_v56 = vpop.permute.xlu1 %257 }
 0x1a5   :  { %588 = vmatmul.msk.bf16.vlgmr.msra.gmra.mxu2 %vm122_vm8, %v109_v44 }
 0x1ad   :  { %592 = vmatmul.msk.bf16.vlgmr.msrb.gmra.mxu1 %vm122_vm8, %v258_v56 }
 0x211   :  { %v253_v59 = vpop.f32.mrf.mxu0 }
 0x212   :  { %v254_v60 = vadd.f32 %v253_v59, %v113_v58 }
 0x214   :  { %v280_v61 = vsel %vm166_vm9, %v254_v60, -inf }
 0x215   :  { %281 = vmax.xlane.f32.xlu0 %v280_v61 }
 0x219   :  { %v255_v62 = vpop.f32.mrf.mxu0 }
 0x21a   :  { %v138_v63 = vpop.f32.mrf.mxu1 }
 0x21b   :  { %v139_v0 = vadd.f32 %v138_v63, %v113_v58  ;;  %v633_v63 = vld [vmem:[%s877_s3 + $0x8] sm:$0xff] }
 0x21c   :  { %382 = vmatpush.bf16.msra.mxu0 %v633_v63 }
 0x21d   :  { %v167_v2 = vsel %vm166_vm9, %v139_v0, -inf }
 0x21e   :  { %168 = vmax.xlane.f32.xlu2 %v167_v2 }
 0x222   :  { %v140_v5 = vpop.f32.mrf.mxu1 }
 0x228   :  { %v162_v7 = vpop.f32.mrf.mxu2 }
 0x229   :  { %v163_v8 = vadd.f32 %v162_v7, %v114_v6  ;;  %213 = vrot.lane.b32.xlu0 %v790_v46, %s719_s10 }
 0x22a   :  { %v276_v9 = vpop.f32.mrf.mxu1 }
 0x22b   :  { %v277_v10 = vadd.f32 %v276_v9, %v114_v6  ;;  %v170_v11 = vsel %vm166_vm9, %v163_v8, -inf }
 0x22c   :  { %171 = vmax.xlane.f32.xlu1 %v170_v11 }
 0x22d   :  { %v283_v12 = vsel %vm166_vm9, %v277_v10, -inf }
 0x22e   :  { %284 = vmax.xlane.f32.xlu2 %v283_v12 }
 0x230   :  { %v164_v13 = vpop.f32.mrf.mxu2 }
 0x232   :  { %v278_v14 = vpop.f32.mrf.mxu1 }
 0x245   :  { %191 = vrot.lane.b32.xlu1 %v119_v42, %s719_s10 }
 0x24d   :  { %304 = vrot.lane.b32.xlu1 %v119_v42, %s720_s1 }
 0x288   :  { %v282_v16 = vpop.xlane.xlu0 %281 }
 0x289   :  { %v286_v19 = vsub.f32 %v254_v60, %v282_v16 }
 0x28b   :  { %v288_v21 = vmul.f32 1.442695, %v286_v19 }
 0x291   :  { %v169_v17 = vpop.xlane.xlu2 %168 }
 0x292   :  { %v173_v18 = vsub.f32 %v139_v0, %v169_v17 }
 0x294   :  { %v175_v20 = vmul.f32 1.442695, %v173_v18 }
 0x296   :  { %665 = vpow2.f32 %v175_v20 }
 0x297   :  { %667 = vpow2.f32 %v288_v21 }
 0x29b   :  { %v214_v36 = vpop.permute.xlu0 %213 }
 0x29c   :  { %v666_v22 = vpop.eup %665  ;;  %v219_v39 = vsel %vm196_vm10, %v214_v36, 0 }
 0x29d   :  { %v179_v23 = vsel %vm166_vm9, %v666_v22, 0.0  ;;  %v668_v27 = vpop.eup %667 }
 0x29e   :  { %180 = vadd.xlane.f32.xlu2 %v179_v23  ;;  %v292_v30 = vsel %vm166_vm9, %v668_v27, 0.0 }
 0x29f   :  { %v172_v24 = vpop.xlane.xlu1 %171 }
 0x2a0   :  { %v174_v25 = vsub.f32 %v163_v8, %v172_v24  ;;  %v632_v8 = vld [vmem:[%s877_s3] sm:$0xff]  ;;  %v635_v24 = vld [vmem:[%s878_s4 + $0x8] sm:$0xff] }
 0x2a1   :  { %v285_v26 = vpop.xlane.xlu2 %284  ;;  %383 = vmatpush.bf16.msra.mxu0 %v632_v8  ;;  %452 = vmatpush.bf16.msra.mxu1 %v635_v24 }
 0x2a2   :  { %v177_v28 = vmul.f32 1.442695, %v174_v25  ;;  %v287_v29 = vsub.f32 %v277_v10, %v285_v26 }
 0x2a4   :  { %669 = vpow2.f32 %v177_v28  ;;  %v290_v31 = vmul.f32 1.442695, %v287_v29 }
 0x2a6   :  { %293 = vadd.xlane.f32.xlu2 %v292_v30  ;;  %671 = vpow2.f32 %v290_v31 }
 0x2aa   :  { %v670_v32 = vpop.eup %669 }
 0x2ab   :  { %v182_v33 = vsel %vm166_vm9, %v670_v32, 0.0 }
 0x2ac   :  { %v672_v34 = vpop.eup %671 }
 0x2ad   :  { %v295_v35 = vsel %vm166_vm9, %v672_v34, 0.0 }
 0x2ae   :  { %183 = vadd.xlane.f32.xlu2 %v182_v33 }
 0x2b6   :  { %296 = vadd.xlane.f32.xlu2 %v295_v35 }
 0x2b7   :  { %v192_v37 = vpop.permute.xlu1 %191 }
 0x2b8   :  { %v198_v38 = vsel %vm196_vm10, %v192_v37, 0 }
 0x2b9   :  { %207 = vmatpush.bf16.msra.mxu3 %v198_v38 }
 0x2bd   :  { %228 = vmatpush.bf16.msrb.mxu3 %v219_v39 }
 0x2bf   :  { %v305_v40 = vpop.permute.xlu1 %304 }
 0x2c0   :  { %v310_v41 = vsel %vm196_vm10, %v305_v40, 0 }
 0x2c1   :  { %319 = vmatpush.bf16.msrb.mxu2 %v310_v41 }
 0x2ce   :  { %325 = vrot.lane.b32.xlu2 %v790_v46, %s720_s1 }
 0x311   :  { %v181_v42 = vpop.xlane.xlu2 %180 }
 0x312   :  { %673 = vrcp.f32 %v181_v42 }
 0x318   :  { %v674_v43 = vpop.eup %673 }
 0x319   :  { %v294_v44 = vpop.xlane.xlu2 %293  ;;  %v187_v45 = vmul.f32 %v674_v43, %v666_v22 }
 0x31a   :  { %675 = vrcp.f32 %v294_v44 }
 0x31b   :  { %v189_v47 = vpack.c.bf16 %v187_v45, %v187_v45 }
 0x31d   :  { %589 = vmatmul.msk.bf16.vlgmr.msra.gmra.mxu3 %vm166_vm9, %v189_v47 }
 0x320   :  { %v676_v48 = vpop.eup %675 }
 0x321   :  { %v300_v49 = vmul.f32 %v676_v48, %v668_v27  ;;  %v184_v50 = vpop.xlane.xlu2 %183 }
 0x322   :  { %677 = vrcp.f32 %v184_v50  ;;  %v637_v50 = vld [vmem:[%s879_s5 + $0x8] sm:$0xff] }
 0x323   :  { %v302_v51 = vpack.c.bf16 %v300_v49, %v300_v49  ;;  %v638_v49 = vld [vmem:[%s879_s5 + $0x10] sm:$0xff] }
 0x325   :  { %593 = vmatmul.msk.bf16.vlgmr.msrb.gmra.mxu2 %vm166_vm9, %v302_v51  ;;  %v636_v51 = vld [vmem:[%s879_s5] sm:$0xff] }
 0x328   :  { %v678_v52 = vpop.eup %677 }
 0x329   :  { %v188_v53 = vmul.f32 %v678_v52, %v670_v32  ;;  %v297_v54 = vpop.xlane.xlu2 %296 }
 0x32a   :  { %679 = vrcp.f32 %v297_v54 }
 0x32b   :  { %v190_v46 = vpack.c.bf16 %v188_v53, %v188_v53 }
 0x32d   :  { %590 = vmatmul.msk.bf16.vlgmr.msrb.gmra.mxu3 %vm166_vm9, %v190_v46 }
 0x330   :  { %v680_v57 = vpop.eup %679 }
 0x331   :  { %v326_v55 = vpop.permute.xlu2 %325  ;;  %v301_v58 = vmul.f32 %v680_v57, %v672_v34 }
 0x332   :  { %v331_v56 = vsel %vm196_vm10, %v326_v55, 0 }
 0x333   :  { %340 = vmatpush.bf16.msra.mxu3 %v331_v56  ;;  %v303_v59 = vpack.c.bf16 %v301_v58, %v301_v58 }
 0x33d   :  { %594 = vmatmul.msk.bf16.vlgmr.msra.gmra.mxu3 %vm166_vm9, %v303_v59 }
 0x3a0   :  { %v209_v60 = vpop.f32.mrf.mxu3 }
 0x3a8   :  { %v211_v61 = vpop.f32.mrf.mxu3  ;;  %v321_v62 = vpop.f32.mrf.mxu2 }
 0x3b0   :  { %v230_v0 = vpop.f32.mrf.mxu3  ;;  %v323_v2 = vpop.f32.mrf.mxu2 }
 0x3b8   :  { %v232_v4 = vpop.f32.mrf.mxu3 }
 0x3c0   :  { %v342_v5 = vpop.f32.mrf.mxu3 }
 0x3c1   :  { %v653_v6 = vpack.i.bf16 %v342_v5, %v321_v62 }
 0x3c3   :  { %654 = vrot.lane.b32.xlu0 %v653_v6, %s721_s13 }
 0x3c8   :  { %v344_v7 = vpop.f32.mrf.mxu3 }
 0x435   :  { %v655_v9 = vpop.permute.xlu0 %654 }
 0x436   :  { %v657_v10 = vunpack.i.h.bf16 %v655_v9  ;;  %v656_v11 = vunpack.i.l.bf16 %v655_v9 }
 0x438   :  { %v355_v12 = vsel %vm122_vm8, %v230_v0, %v657_v10  ;;  %v354_v13 = vsel %vm122_vm8, %v209_v60, %v656_v11 }
 0x439   :  { %v356_v14 = vpack.c.bf16 %v355_v12, %v354_v13 }
 0x43b   :  { %603 = vmatmul.msk.bf16.vlgmr.msra.gmra.mxu0 %vm34_vm0, %v356_v14 }
 0x4b8   :  { %v385_v16 = vpop.f32.mrf.mxu0 }
 0x4b9   :  { %v390_v17 = vadd.f32 %v767_v1, %v385_v16  ;;  %v634_v1 = vld [vmem:[%s878_s4] sm:$0xff] }
 0x4ba   :  { %453 = vmatpush.bf16.msra.mxu1 %v634_v1 }
 0x4bb   :  { %v392_v18 = vmul.f32 %v390_v17, %v390_v17 }
 0x4bd   :  { %v394_v19 = vsel %vm34_vm0, %v392_v18, 0.0 }
 0x4be   :  { %395 = vadd.xlane.f32.xlu1 %v394_v19 }
 0x4c0   :  { %v387_v20 = vpop.f32.mrf.mxu0 }
 0x4c1   :  { %v391_v21 = vadd.f32 %v771_v3, %v387_v20  ;;  %v639_v3 = vld [vmem:[%s879_s5 + $0x18] sm:$0xff] }
 0x4c2   :  { %503 = vmatpush.bf16.msra.mxu2 %v639_v3 }
 0x4c3   :  { %v393_v22 = vmul.f32 %v391_v21, %v391_v21 }
 0x4c5   :  { %v397_v23 = vsel %vm34_vm0, %v393_v22, 0.0 }
 0x4c6   :  { %398 = vadd.xlane.f32.xlu0 %v397_v23  ;;  %504 = vmatpush.bf16.msra.mxu2 %v638_v49 }
 0x4ca   :  { %505 = vmatpush.bf16.msra.mxu2 %v637_v50 }
 0x4ce   :  { %506 = vmatpush.bf16.msra.mxu2 %v636_v51 }
 0x531   :  { %v396_v25 = vpop.xlane.xlu1 %395 }
 0x532   :  { %v400_v26 = vmul.f32 %v396_v25, %v783_v15 }
 0x534   :  { %v402_v27 = vadd.f32 1e-06, %v400_v26 }
 0x536   :  { %681 = vrsqrt.f32 %v402_v27  ;;  %vm410_vm12 = vweird.f32 %v402_v27 }
 0x539   :  { %v399_v28 = vpop.xlane.xlu0 %398 }
 0x53a   :  { %v401_v29 = vmul.f32 %v399_v28, %v783_v15 }
 0x53c   :  { %v682_v30 = vpop.eup %681  ;;  %v403_v31 = vadd.f32 1e-06, %v401_v29 }
 0x53d   :  { %v405_v32 = vmul.f32 %v682_v30, %v402_v27  ;;  %vm411_vm11 = vweird.f32 %v682_v30 }
 0x53e   :  { %683 = vrsqrt.f32 %v403_v31  ;;  %vm412_vm14 = vmor %vm410_vm12, %vm411_vm11  ;;  %vm420_vm15 = vweird.f32 %v403_v31 }
 0x53f   :  { %v406_v33 = vmul.f32 %v682_v30, %v405_v32 }
 0x541   :  { %v407_v34 = vmul.f32 0.5, %v406_v33 }
 0x543   :  { %v408_v36 = vsub.f32 1.5, %v407_v34 }
 0x544   :  { %v684_v35 = vpop.eup %683 }
 0x545   :  { %v415_v37 = vmul.f32 %v684_v35, %v403_v31  ;;  %v409_v39 = vmul.f32 %v682_v30, %v408_v36  ;;  %vm421_vm13 = vweird.f32 %v684_v35 }
 0x546   :  { %vm422_vm1 = vmor %vm420_vm15, %vm421_vm13 }
 0x547   :  { %v416_v38 = vmul.f32 %v684_v35, %v415_v37  ;;  %v413_v42 = vsel %vm412_vm14, %v682_v30, %v409_v39 }
 0x548   :  { %v424_v45 = vmul.f32 %v413_v42, %v390_v17 }
 0x549   :  { %v417_v40 = vmul.f32 0.5, %v416_v38 }
 0x54b   :  { %v418_v41 = vsub.f32 1.5, %v417_v40 }
 0x54d   :  { %v419_v43 = vmul.f32 %v684_v35, %v418_v41 }
 0x54f   :  { %v423_v44 = vsel %vm422_vm1, %v684_v35, %v419_v43 }
 0x550   :  { %v425_v47 = vmul.f32 %v423_v44, %v391_v21 }
 0x552   :  { %v426_v48 = vpack.c.bf16 %v425_v47, %v424_v45 }
 0x554   :  { %612 = vmatmul.msk.bf16.vlgmr.msra.gmra.mxu1 %vm34_vm0, %v426_v48 }
 0x5d1   :  { %v455_v52 = vpop.f32.mrf.mxu1 }
 0x5d2   :  { %v460_v54 = vmax.f32 %v455_v52, 0.0 }
 0x5d9   :  { %v457_v53 = vpop.f32.mrf.mxu1 }
 0x5da   :  { %v461_v46 = vmax.f32 %v457_v53, 0.0 }
 0x5dc   :  { %v462_v55 = vpack.c.bf16 %v461_v46, %v460_v54 }
 0x5de   :  { %629 = vmatmul.msk.bf16.vlgmr.msra.gmra.mxu2 %vm495_vm2, %v462_v55 }
 0x661   :  { %v508_v56 = vpop.f32.mrf.mxu2 }
 0x662   :  { %v513_v57 = vadd.f32 %v508_v56, %v390_v17  ;;  %v658_v17 = vld [vmem:[%s880_s6] ss:$0 sm:$0xff] }
 0x664   :  { %v515_v58 = vmul.f32 %v513_v57, %v513_v57 }
 0x666   :  { %v517_v59 = vsel %vm34_vm0, %v515_v58, 0.0 }
 0x667   :  { %518 = vadd.xlane.f32.xlu2 %v517_v59 }
 0x669   :  { %v510_v60 = vpop.f32.mrf.mxu2 }
 0x66a   :  { %v514_v61 = vadd.f32 %v510_v60, %v391_v21 }
 0x66c   :  { %v516_v62 = vmul.f32 %v514_v61, %v514_v61 }
 0x66e   :  { %v520_v63 = vsel %vm34_vm0, %v516_v62, 0.0 }
 0x66f   :  { %521 = vadd.xlane.f32.xlu1 %v520_v63 }
 0x6da   :  { %v519_v0 = vpop.xlane.xlu2 %518 }
 0x6db   :  { %v523_v2 = vmul.f32 %v519_v0, %v783_v15 }
 0x6dd   :  { %v525_v4 = vadd.f32 1e-06, %v523_v2 }
 0x6df   :  { %685 = vrsqrt.f32 %v525_v4  ;;  %vm533_vm0 = vweird.f32 %v525_v4 }
 0x6e2   :  { %v522_v5 = vpop.xlane.xlu1 %521 }
 0x6e3   :  { %v524_v6 = vmul.f32 %v522_v5, %v783_v15 }
 0x6e5   :  { %v686_v7 = vpop.eup %685  ;;  %v526_v8 = vadd.f32 1e-06, %v524_v6 }
 0x6e6   :  { %v528_v9 = vmul.f32 %v686_v7, %v525_v4  ;;  %vm534_vm3 = vweird.f32 %v686_v7 }
 0x6e7   :  { %687 = vrsqrt.f32 %v526_v8  ;;  %vm535_vm4 = vmor %vm533_vm0, %vm534_vm3  ;;  %vm543_vm7 = vweird.f32 %v526_v8 }
 0x6e8   :  { %v529_v10 = vmul.f32 %v686_v7, %v528_v9 }
 0x6ea   :  { %v530_v11 = vmul.f32 0.5, %v529_v10 }
 0x6ec   :  { %v531_v12 = vsub.f32 1.5, %v530_v11 }
 0x6ed   :  { %v688_v13 = vpop.eup %687 }
 0x6ee   :  { %v532_v14 = vmul.f32 %v686_v7, %v531_v12  ;;  %v538_v16 = vmul.f32 %v688_v13, %v526_v8  ;;  %vm544_vm5 = vweird.f32 %v688_v13 }
 0x6ef   :  { %vm545_vm8 = vmor %vm543_vm7, %vm544_vm5 }
 0x6f0   :  { %v536_v18 = vsel %vm535_vm4, %v686_v7, %v532_v14  ;;  %v539_v19 = vmul.f32 %v688_v13, %v538_v16 }
 0x6f1   :  { %v547_v15 = vmul.f32 %v536_v18, %v513_v57 }
 0x6f2   :  { %v540_v20 = vmul.f32 0.5, %v539_v19 }
 0x6f3   :  { %v553_v21 = vmul.f32 %v658_v17, %v547_v15 }
 0x6f4   :  { %v541_v22 = vsub.f32 1.5, %v540_v20 }
 0x6f5   :  { %v555_v23 = vpack.c.bf16 %v553_v21, %v553_v21 }
 0x6f6   :  { %v542_v24 = vmul.f32 %v688_v13, %v541_v22 }
 0x6f7   :  { %558 = vst.msk [vmem:[#allocation2] sm:$0xf] %vm557_vm6, %v555_v23 }
 0x6f8   :  { %v546_v1 = vsel %vm545_vm8, %v688_v13, %v542_v24 }
 0x6f9   :  { %v548_v25 = vmul.f32 %v546_v1, %v514_v61 }
 0x6fb   :  { %v554_v26 = vmul.f32 %v658_v17, %v548_v25 }
 0x6fd   :  { %v556_v27 = vpack.c.bf16 %v554_v26, %v554_v26 }
 0x6ff   :  { %559 = vst.msk [vmem:[#allocation2 + $0x4] sm:$0xf] %vm557_vm6, %v556_v27 }
 0x700   :  { %572 = dma.vmem_to_hbm [thread:$0]  %s565_s27, 128, %s567_s2, [#allocation3], %s719_s10, %s719_s10, %s723_s29  }
 0x701   :  { %713 = dma.done.wait [#allocation3], 128  }
 0x702   :  { %714 = vsyncadd [#allocation3], 4294967168 }
 0x703   :  { %577 = vsyncpa [#allocation3], 1 }

</bundles_post_ra>
